<compile_context>
chip_gen: v7x
topology: tpu7x:2x2x1
jax: 0.10.0
libtpu: 0.0.40
codegen_flags: <defaults>
</compile_context>

<pallas_src>
import numpy as np
import jax
import jax.numpy as jnp
from jax.experimental import pallas as pl
from jax.experimental.pallas import tpu as pltpu

F_IN, F_H1, F_H2, F_OUT = 256, 256, 128, 64
F_OUT_PAD = 128  # lane-dense padded width of the final layer's output


# ---------------------------------------------------------------------------
# Fused Pallas kernel: full 3-layer encoder forward for one group of G graphs
# (packed block-diagonally -> all matmuls are plain rank-2 MXU matmuls).
#   relu(A @ (X @ W1) + b1) -> relu(A @ (. @ W2) + b2) -> A @ (. @ W3p) + b3p
# Feature matmuls: bf16 operands, f32 accumulation.
# Aggregation matmuls: f32 x f32 (accuracy; A is a normalized adjacency).
# ---------------------------------------------------------------------------
def _encoder_kernel(a_ref, x_ref, w1_ref, b1_ref, w2_ref, b2_ref,
                    w3_ref, b3_ref, o_ref):
    a = a_ref[...]                                                  # [GN, GN] f32

    # ---- layer 1: relu(A @ (X @ W1) + b1) ---------------------------------
    xw = jnp.dot(x_ref[...], w1_ref[...], preferred_element_type=jnp.float32)
    h = jnp.dot(a, xw, preferred_element_type=jnp.float32) + b1_ref[...]
    h = jnp.maximum(h, 0.0)

    # ---- layer 2: relu(A @ (H @ W2) + b2) ---------------------------------
    xw = jnp.dot(h.astype(jnp.bfloat16), w2_ref[...],
                 preferred_element_type=jnp.float32)
    h = jnp.dot(a, xw, preferred_element_type=jnp.float32) + b2_ref[...]
    h = jnp.maximum(h, 0.0)

    # ---- layer 3 (no relu); W3/b3 zero-padded to 128 output lanes ---------
    xw = jnp.dot(h.astype(jnp.bfloat16), w3_ref[...],
                 preferred_element_type=jnp.float32)
    h = jnp.dot(a, xw, preferred_element_type=jnp.float32) + b3_ref[...]

    o_ref[...] = h.astype(o_ref.dtype)                              # [GN, 128] bf16


def _vmem_limit_bytes(gn):
    # Double-buffered per-step blocks (A, X, out) + resident weights + headroom.
    per_step = gn * gn * 4 + gn * F_IN * 2 + gn * F_OUT_PAD * 2
    weights = ((F_IN * F_H1 + F_H1 * F_H2 + F_H2 * F_OUT_PAD) * 2
               + (F_H1 + F_H2 + F_OUT_PAD) * 4)
    need = 2 * per_step + 2 * weights + (8 << 20)     # + headroom for f32 temps
    return int(min(max(need, 16 << 20), 48 << 20))    # cap for v7x (64 MiB VMEM)


def encoder_forward(x, a_norm, params, *, graphs_per_step=None):
    """Fused, batched forward pass of the 3-layer GCN encoder.

    x:      [B, N, 256] node features (f32)
    a_norm: [B, N, N]   per-graph normalized adjacency (f32)
    returns [B, N, 64]  (bf16)
    """
    (w1, b1), (w2, b2), (w3, b3) = params
    B, N, _ = x.shape

    # Pick G so that G*N ~ 128 rows per MXU matmul; G must divide B.
    if graphs_per_step is None:
        graphs_per_step = max(1, min(B, 128 // N)) if N < 128 else 1
    G = graphs_per_step
    while B % G:
        G -= 1
    GN = G * N
    ng = B // G
    assert ng == 1 or GN % 8 == 0, "G*N must be a multiple of 8 (sublane tile)"

    # Block-diagonal A per group of G graphs: [ng, GN, GN] -> flattened 2-D.
    a_grp = a_norm.astype(jnp.float32).reshape(ng, G, N, N)
    eye_g = jnp.eye(G, dtype=jnp.float32)
    a_bd = jnp.einsum('sgij,gh->sgihj', a_grp, eye_g).reshape(ng * GN, GN)

    # bf16 MXU operands for the feature matmuls; biases stay f32.
    x_bf = x.reshape(B * N, F_IN).astype(jnp.bfloat16)
    w1_bf = w1.astype(jnp.bfloat16)
    w2_bf = w2.astype(jnp.bfloat16)
    # Lane-dense final layer: zero-pad 64 -> 128 output columns.
    w3_bf = (jnp.zeros((F_H2, F_OUT_PAD), jnp.bfloat16)
             .at[:, :F_OUT].set(w3.astype(jnp.bfloat16)))
    b3_p = jnp.zeros((1, F_OUT_PAD), jnp.float32).at[:, :F_OUT].set(b3)

    feat_flops = 2 * GN * (F_IN * F_H1 + F_H1 * F_H2 + F_H2 * F_OUT_PAD)
    agg_flops = 2 * GN * GN * (F_H1 + F_H2 + F_OUT_PAD)
    flops = int(ng * (feat_flops + agg_flops))
    bytes_accessed = int(
        a_bd.size * 4 + x_bf.size * 2
        + (w1_bf.size + w2_bf.size + w3_bf.size) * 2
        + (b1.size + b2.size + b3_p.size) * 4
        + B * N * F_OUT_PAD * 2)

    const2d = lambda s: (0, 0)  # weights/biases: DMA'd once, VMEM-resident

    out_padded = pl.pallas_call(
        _encoder_kernel,
        out_shape=jax.ShapeDtypeStruct((ng * GN, F_OUT_PAD), jnp.bfloat16),
        grid=(ng,),
        in_specs=[
            pl.BlockSpec((GN, GN), lambda s: (s, 0)),        # A (block-diag)  f32
            pl.BlockSpec((GN, F_IN), lambda s: (s, 0)),      # X               bf16
            pl.BlockSpec((F_IN, F_H1), const2d),             # W1              bf16
            pl.BlockSpec((1, F_H1), const2d),                # b1              f32
            pl.BlockSpec((F_H1, F_H2), const2d),             # W2              bf16
            pl.BlockSpec((1, F_H2), const2d),                # b2              f32
            pl.BlockSpec((F_H2, F_OUT_PAD), const2d),        # W3 (padded)     bf16
            pl.BlockSpec((1, F_OUT_PAD), const2d),           # b3 (padded)     f32
        ],
        out_specs=pl.BlockSpec((GN, F_OUT_PAD), lambda s: (s, 0)),
        compiler_params=pltpu.CompilerParams(
            dimension_semantics=("parallel",),               # v7x: 2 TCs
            vmem_limit_bytes=_vmem_limit_bytes(GN),
        ),
        cost_estimate=pl.CostEstimate(
            flops=flops, transcendentals=0, bytes_accessed=bytes_accessed),
    )(a_bd, x_bf, w1_bf, b1, w2_bf, b2, w3_bf, b3_p)

    # Drop the lane padding and restore the [B, N, 64] shape.
    return out_padded[:, :F_OUT].reshape(B, N, F_OUT)


# ---------------------------------------------------------------------------
# Graph normalization (plain JAX, done once per graph):
#   scatter-ADD edges (multigraph-safe, like PyG's gcn_norm), add self-loops
#   only where missing, then A_norm = D^-1/2 (A + I_missing) D^-1/2.
# ---------------------------------------------------------------------------
def normalized_adjacency(edge_index, num_nodes):
    src, dst = edge_index[0], edge_index[1]
    # PyG propagates from source j to target i: A[i, j] accumulates edge weight.
    a = jnp.zeros((num_nodes, num_nodes), jnp.float32).at[dst, src].add(1.0)
    diag = jnp.diagonal(a)
    a = a + jnp.diag(jnp.where(diag > 0.0, 0.0, 1.0))  # add_remaining_self_loops
    deg = jnp.sum(a, axis=1)
    d_inv_sqrt = jnp.where(deg > 0, jax.lax.rsqrt(deg), 0.0)
    return d_inv_sqrt[:, None] * a * d_inv_sqrt[None, :]


# ---------------------------------------------------------------------------
# Parameter init (deterministic, glorot-uniform like PyG's GCNConv).
# ---------------------------------------------------------------------------
def init_params(key):
    dims = [(F_IN, F_H1), (F_H1, F_H2), (F_H2, F_OUT)]
    params = []
    for i, (fi, fo) in enumerate(dims):
        kw = jax.random.fold_in(key, i)
        limit = jnp.sqrt(6.0 / (fi + fo))
        w = jax.random.uniform(kw, (fi, fo), jnp.float32, -limit, limit)
        b = jnp.zeros((1, fo), dtype=jnp.float32)
        params.append((w, b))
    return params


# Pure-JAX f32 reference (single graph) for validation.
def encoder_reference(x, a_norm, params):
    h = x
    for i, (w, b) in enumerate(params):
        h = a_norm @ (h @ w) + b
        if i < len(params) - 1:
            h = jnp.maximum(h, 0.0)
    return h


if __name__ == "__main__":
    key = jax.random.PRNGKey(0)
    num_graphs = 32          # batched: many graphs per pallas_call
    num_nodes = 16
    num_edges = 32

    k_x, k_e, k_p = jax.random.split(key, 3)
    x = jax.random.normal(k_x, (num_graphs, num_nodes, F_IN), dtype=jnp.float32)

    # Small deterministic synthetic edge lists (stand-in for the CSV graph).
    a_list = []
    for b in range(num_graphs):
        src = jax.random.randint(jax.random.fold_in(k_e, 2 * b),
                                 (num_edges,), 0, num_nodes)
        dst = jax.random.randint(jax.random.fold_in(k_e, 2 * b + 1),
                                 (num_edges,), 0, num_nodes)
        edge_index = jnp.stack([src, dst], axis=0).astype(jnp.int32)
        a_list.append(normalized_adjacency(edge_index, num_nodes))
    a_norm = jnp.stack(a_list, axis=0)                    # [B, N, N] f32

    params = init_params(k_p)

    out = jax.jit(encoder_forward)(x, a_norm, params)
    jax.block_until_ready(out)

    assert out.shape == (num_graphs, num_nodes, F_OUT), out.shape

    # Loose tolerance: bf16 feature matmuls / bf16 output vs. f32 reference.
    ref = jax.vmap(encoder_reference, in_axes=(0, 0, None))(x, a_norm, params)
    np.testing.assert_allclose(np.asarray(out.astype(jnp.float32)),
                               np.asarray(ref), atol=1e-1, rtol=1e-1)

    print("KERNEL_OK")
</pallas_src>

<mosaic_0001>
module attributes {stable_mosaic.version = 11 : i64} {
  func.func @_encoder_kernel(%arg0: i32, %arg1: memref<128x128xf32, #tpu.memory_space<vmem>>, %arg2: memref<128x256xbf16, #tpu.memory_space<vmem>>, %arg3: memref<256x256xbf16, #tpu.memory_space<vmem>>, %arg4: memref<1x256xf32, #tpu.memory_space<vmem>>, %arg5: memref<256x128xbf16, #tpu.memory_space<vmem>>, %arg6: memref<1x128xf32, #tpu.memory_space<vmem>>, %arg7: memref<128x128xbf16, #tpu.memory_space<vmem>>, %arg8: memref<1x128xf32, #tpu.memory_space<vmem>>, %arg9: memref<128x128xbf16, #tpu.memory_space<vmem>>) attributes {dimension_semantics = [#tpu.dimension_semantics<parallel>], iteration_bounds = array<i64: 4>, scalar_prefetch = 0 : i64, scratch_operands = 0 : i64, tpu.core_type = #tpu.core_type<tc>, window_params = [{transform_indices = @transform_0, window_bounds = array<i64: 128, 128>}, {transform_indices = @transform_1, window_bounds = array<i64: 128, 256>}, {pipeline_mode = #tpu.pipeline_mode<synchronous>, transform_indices = @transform_2, window_bounds = array<i64: 256, 256>}, {pipeline_mode = #tpu.pipeline_mode<synchronous>, transform_indices = @transform_3, window_bounds = array<i64: 1, 256>}, {pipeline_mode = #tpu.pipeline_mode<synchronous>, transform_indices = @transform_4, window_bounds = array<i64: 256, 128>}, {pipeline_mode = #tpu.pipeline_mode<synchronous>, transform_indices = @transform_5, window_bounds = array<i64: 1, 128>}, {pipeline_mode = #tpu.pipeline_mode<synchronous>, transform_indices = @transform_6, window_bounds = array<i64: 128, 128>}, {pipeline_mode = #tpu.pipeline_mode<synchronous>, transform_indices = @transform_7, window_bounds = array<i64: 1, 128>}, {transform_indices = @transform_8, window_bounds = array<i64: 128, 128>}]} {
    %c0 = arith.constant 0 : index
    %c0_0 = arith.constant 0 : index
    %0 = vector.load %arg1[%c0, %c0_0] : memref<128x128xf32, #tpu.memory_space<vmem>>, vector<128x128xf32>
    %c0_1 = arith.constant 0 : index
    %c0_2 = arith.constant 0 : index
    %1 = vector.load %arg2[%c0_1, %c0_2] : memref<128x256xbf16, #tpu.memory_space<vmem>>, vector<128x256xbf16>
    %c0_3 = arith.constant 0 : index
    %c0_4 = arith.constant 0 : index
    %2 = vector.load %arg3[%c0_3, %c0_4] : memref<256x256xbf16, #tpu.memory_space<vmem>>, vector<256x256xbf16>
    %cst = arith.constant dense<0.000000e+00> : vector<128x256xf32>
    %3 = tpu.matmul %1, %2, %cst {dimension_numbers = #tpu.dot_dimension_numbers<[1], [0], [0], [1], [0, 0, 1, 1], [], []>} : vector<128x256xbf16>, vector<256x256xbf16>, vector<128x256xf32> -> vector<128x256xf32>
    %cst_5 = arith.constant dense<0.000000e+00> : vector<128x256xf32>
    %4 = tpu.matmul %0, %3, %cst_5 {dimension_numbers = #tpu.dot_dimension_numbers<[1], [0], [0], [1], [0, 0, 1, 1], [], []>} : vector<128x128xf32>, vector<128x256xf32>, vector<128x256xf32> -> vector<128x256xf32>
    %c0_6 = arith.constant 0 : index
    %c0_7 = arith.constant 0 : index
    %5 = vector.load %arg4[%c0_6, %c0_7] : memref<1x256xf32, #tpu.memory_space<vmem>>, vector<1x256xf32>
    %6 = vector.broadcast %5 : vector<1x256xf32> to vector<128x256xf32>
    %7 = arith.addf %4, %6 : vector<128x256xf32>
    %cst_8 = arith.constant 0.000000e+00 : f32
    %8 = vector.broadcast %cst_8 : f32 to vector<128x256xf32>
    %9 = arith.maximumf %7, %8 : vector<128x256xf32>
    %10 = arith.truncf %9 : vector<128x256xf32> to vector<128x256xbf16>
    %c0_9 = arith.constant 0 : index
    %c0_10 = arith.constant 0 : index
    %11 = vector.load %arg5[%c0_9, %c0_10] : memref<256x128xbf16, #tpu.memory_space<vmem>>, vector<256x128xbf16>
    %cst_11 = arith.constant dense<0.000000e+00> : vector<128x128xf32>
    %12 = tpu.matmul %10, %11, %cst_11 {dimension_numbers = #tpu.dot_dimension_numbers<[1], [0], [0], [1], [0, 0, 1, 1], [], []>} : vector<128x256xbf16>, vector<256x128xbf16>, vector<128x128xf32> -> vector<128x128xf32>
    %cst_12 = arith.constant dense<0.000000e+00> : vector<128x128xf32>
    %13 = tpu.matmul %0, %12, %cst_12 {dimension_numbers = #tpu.dot_dimension_numbers<[1], [0], [0], [1], [0, 0, 1, 1], [], []>} : vector<128x128xf32>, vector<128x128xf32>, vector<128x128xf32> -> vector<128x128xf32>
    %c0_13 = arith.constant 0 : index
    %c0_14 = arith.constant 0 : index
    %14 = vector.load %arg6[%c0_13, %c0_14] : memref<1x128xf32, #tpu.memory_space<vmem>>, vector<1x128xf32>
    %15 = vector.broadcast %14 : vector<1x128xf32> to vector<128x128xf32>
    %16 = arith.addf %13, %15 : vector<128x128xf32>
    %cst_15 = arith.constant 0.000000e+00 : f32
    %17 = vector.broadcast %cst_15 : f32 to vector<128x128xf32>
    %18 = arith.maximumf %16, %17 : vector<128x128xf32>
    %19 = arith.truncf %18 : vector<128x128xf32> to vector<128x128xbf16>
    %c0_16 = arith.constant 0 : index
    %c0_17 = arith.constant 0 : index
    %20 = vector.load %arg7[%c0_16, %c0_17] : memref<128x128xbf16, #tpu.memory_space<vmem>>, vector<128x128xbf16>
    %cst_18 = arith.constant dense<0.000000e+00> : vector<128x128xf32>
    %21 = tpu.matmul %19, %20, %cst_18 {dimension_numbers = #tpu.dot_dimension_numbers<[1], [0], [0], [1], [0, 0, 1, 1], [], []>} : vector<128x128xbf16>, vector<128x128xbf16>, vector<128x128xf32> -> vector<128x128xf32>
    %cst_19 = arith.constant dense<0.000000e+00> : vector<128x128xf32>
    %22 = tpu.matmul %0, %21, %cst_19 {dimension_numbers = #tpu.dot_dimension_numbers<[1], [0], [0], [1], [0, 0, 1, 1], [], []>} : vector<128x128xf32>, vector<128x128xf32>, vector<128x128xf32> -> vector<128x128xf32>
    %c0_20 = arith.constant 0 : index
    %c0_21 = arith.constant 0 : index
    %23 = vector.load %arg8[%c0_20, %c0_21] : memref<1x128xf32, #tpu.memory_space<vmem>>, vector<1x128xf32>
    %24 = vector.broadcast %23 : vector<1x128xf32> to vector<128x128xf32>
    %25 = arith.addf %22, %24 : vector<128x128xf32>
    %26 = arith.truncf %25 : vector<128x128xf32> to vector<128x128xbf16>
    %c0_22 = arith.constant 0 : index
    %c0_23 = arith.constant 0 : index
    %27 = vector.load %arg9[%c0_22, %c0_23] : memref<128x128xbf16, #tpu.memory_space<vmem>>, vector<128x128xbf16>
    tpu.vector_store %arg9[%c0_22, %c0_23], %26 {strides = array<i32>} : memref<128x128xbf16, #tpu.memory_space<vmem>>, vector<128x128xbf16>,
    return
  }
  func.func @transform_0(%arg0: i32) -> (i32, i32) {
    %c0_i32 = arith.constant 0 : i32
    %c0_i32_0 = arith.constant 0 : i32
    return %arg0, %c0_i32 : i32, i32
  }
  func.func @transform_1(%arg0: i32) -> (i32, i32) {
    %c0_i32 = arith.constant 0 : i32
    %c0_i32_0 = arith.constant 0 : i32
    return %arg0, %c0_i32 : i32, i32
  }
  func.func @transform_2(%arg0: i32) -> (i32, i32) {
    %c0_i32 = arith.constant 0 : i32
    %c0_i32_0 = arith.constant 0 : i32
    %c0_i32_1 = arith.constant 0 : i32
    return %c0_i32, %c0_i32_0 : i32, i32
  }
  func.func @transform_3(%arg0: i32) -> (i32, i32) {
    %c0_i32 = arith.constant 0 : i32
    %c0_i32_0 = arith.constant 0 : i32
    %c0_i32_1 = arith.constant 0 : i32
    return %c0_i32, %c0_i32_0 : i32, i32
  }
  func.func @transform_4(%arg0: i32) -> (i32, i32) {
    %c0_i32 = arith.constant 0 : i32
    %c0_i32_0 = arith.constant 0 : i32
    %c0_i32_1 = arith.constant 0 : i32
    return %c0_i32, %c0_i32_0 : i32, i32
  }
  func.func @transform_5(%arg0: i32) -> (i32, i32) {
    %c0_i32 = arith.constant 0 : i32
    %c0_i32_0 = arith.constant 0 : i32
    %c0_i32_1 = arith.constant 0 : i32
    return %c0_i32, %c0_i32_0 : i32, i32
  }
  func.func @transform_6(%arg0: i32) -> (i32, i32) {
    %c0_i32 = arith.constant 0 : i32
    %c0_i32_0 = arith.constant 0 : i32
    %c0_i32_1 = arith.constant 0 : i32
    return %c0_i32, %c0_i32_0 : i32, i32
  }
  func.func @transform_7(%arg0: i32) -> (i32, i32) {
    %c0_i32 = arith.constant 0 : i32
    %c0_i32_0 = arith.constant 0 : i32
    %c0_i32_1 = arith.constant 0 : i32
    return %c0_i32, %c0_i32_0 : i32, i32
  }
  func.func @transform_8(%arg0: i32) -> (i32, i32) {
    %c0_i32 = arith.constant 0 : i32
    %c0_i32_0 = arith.constant 0 : i32
    return %arg0, %c0_i32 : i32, i32
  }
}

</mosaic_0001>

<bundles_post_ra>
// kernel: encoder_forward.1
= control target key start
LH: loop header
LB: loop body
LE: loop exit
PB: predicated region body
PF: predicated region fallthrough
CT: control target
= control target key end

     0   :  { %13 = vsyncpa [#allocation3], 0  ;;  %s3130_s0 = inlined_call_operand.vmem [shape: f32[512,128], index: 0, kind: input, shape index: {}]   ;;  %s3131_s1 = inlined_call_operand.vmem [shape: bf16[512,256], index: 1, kind: input, shape index: {}]   ;;  %s3132_s2 = inlined_call_operand.vmem [shape: bf16[256,256], index: 2, kind: input, shape index: {}]   ;;  %s3133_s3 = inlined_call_operand.vmem [shape: f32[1,256], index: 3, kind: input, shape index: {}]   ;;  %s3134_s4 = inlined_call_operand.vmem [shape: bf16[256,128], index: 4, kind: input, shape index: {}]   ;;  %s3135_s5 = inlined_call_operand.vmem [shape: f32[1,128], index: 5, kind: input, shape index: {}]   ;;  %s3136_s6 = inlined_call_operand.vmem [shape: bf16[128,128], index: 6, kind: input, shape index: {}]   ;;  %s3137_s7 = inlined_call_operand.vmem [shape: f32[1,128], index: 7, kind: input, shape index: {}]   ;;  %s3138_s8 = inlined_call_operand.hbm [shape: bf16[512,128], index: 8, kind: output, shape index: {}]  }
   0x1   :  { %15 = vsyncpa [#allocation3 + $0x1], 0  ;;  %s2658_s27 = smov 0   ;;  %s2660_s28 = smov 0  }
   0x2   :  { %s2662_s29 = smov 0   ;;  %s2664_s30 = smov 0  }
   0x3 LB: > { %s2679_s9 = sadd.s32 4294967295, %s2607_s30   ;;  %s1853_s10 = sadd.s32 4294967294, %s2607_s30   ;;  %s2607_s30 = sphi %s2664_s30, %s3144_s30   ;;  %s2603_s29 = sphi %s2662_s29, %s3143_s29   ;;  %s2599_s28 = sphi %s2660_s28, %s3142_s28   ;;  %s2595_s27 = sphi %s2658_s27, %s3141_s27  }
   0x4   : > { %s2683_s11 = sadd.s32 1, %s2607_s30   ;;  %s206_s12 = sadd.s32 1, %s2603_s29 }
   0x5   : > { %s203_s13 = ssub.s32 %s2607_s30, %s2683_s11  ;;  %p216_p0 = scmp.ne.s32.totalorder %s2603_s29, %s2599_s28 }
   0x6   : > { %p204_p1 = scmp.eq.s32.totalorder %s203_s13, 0  ;;  %p217_p2 = scmp.eq.s32.totalorder %s2679_s9, 3 }
   0x7   : > { %p222_p3 = scmp.ne.s32.totalorder %s2599_s28, %s2595_s27  ;;  %p223_p4 = scmp.eq.s32.totalorder %s1853_s10, 3 }
   0x8   : > { %s2694_s14 = scalar_select %p204_p1, %s2603_s29, %s206_s12  }
   0x9   : > { %p2696_p5 = por %p217_p2, %p216_p0  ;;  %p2700_p6 = por %p223_p4, %p222_p3 }
   0xa   : > { %p1856_p7 = scmp.ge.s32.totalorder %s2607_s30, 1  ;;  %p278_p8 = scmp.lt.s32.totalorder %s2607_s30, 5 }
   0xc   : > { %p279_p9 = pnand %p1856_p7, %p278_p8 }
   0xd   : > { %v2449_v0 = vld [vmem:[%s3132_s2 + $0x4] ss:$8 sps:$4 sm:$0xff] (!%p279_p9)   ;;  %v2451_v1 = vld [vmem:[%s3132_s2] ss:$8 sps:$4 sm:$0xff] (!%p279_p9)   ;;  %v2452_v2 = vld [vmem:[%s3132_s2 + $0x14] ss:$8 sps:$4 sm:$0xff] (!%p279_p9)  }
   0xe   : > { %282 = sbr.rel (%p279_p9) target bundleno = 1590 (0x636), region = 52  ;;  %637 = vmatprep.subr.bf16.mxu0 (!%p279_p9), %v2449_v0  ;;  %v2454_v3 = vld [vmem:[%s3132_s2 + $0x10] ss:$8 sps:$4 sm:$0xff] (!%p279_p9)   ;;  %v2455_v4 = vld [vmem:[%s3132_s2 + $0x24] ss:$8 sps:$4 sm:$0xff] (!%p279_p9)   ;;  %s1858_s10 = sshll.u32 (!%p279_p9), %s2679_s9, 4 }
   0xf   : > { %638 = vmatpush1.bf16.msra.mxu0 (!%p279_p9), %v2451_v1  ;;  %v2457_v5 = vld [vmem:[%s3132_s2 + $0x20] ss:$8 sps:$4 sm:$0xff] (!%p279_p9)   ;;  %v2458_v6 = vld [vmem:[%s3132_s2 + $0x34] ss:$8 sps:$4 sm:$0xff] (!%p279_p9)   ;;  %p319_p10 = scmp.lt.s32.totalorder (!%p279_p9), %s1858_s10, 63  ;;  %v2609_v48 = vmov (!%p279_p9), 0.0  }
  0x10   : > { %639 = vmatprep.subr.bf16.mxu0 (!%p279_p9), %v2452_v2  ;;  %v2460_v7 = vld [vmem:[%s3132_s2 + $0x30] ss:$8 sps:$4 sm:$0xff] (!%p279_p9)   ;;  %v2461_v8 = vld [vmem:[%s3132_s2 + $0x44] ss:$8 sps:$4 sm:$0xff] (!%p279_p9)   ;;  %v2463_v9 = vld [vmem:[%s3132_s2 + $0x40] ss:$8 sps:$4 sm:$0xff] (!%p279_p9)   ;;  %826 = vmatprep.mubr.f32.mxu1 (!%p279_p9), %v2609_v48 }
  0x11   : > { %v2464_v10 = vld [vmem:[%s3132_s2 + $0x54] ss:$8 sps:$4 sm:$0xff] (!%p279_p9)   ;;  %v2466_v11 = vld [vmem:[%s3132_s2 + $0x50] ss:$8 sps:$4 sm:$0xff] (!%p279_p9)   ;;  %v2467_v12 = vld [vmem:[%s3132_s2 + $0x64] ss:$8 sps:$4 sm:$0xff] (!%p279_p9)  }
  0x12   : > { %v2469_v14 = vld [vmem:[%s3132_s2 + $0x60] ss:$8 sps:$4 sm:$0xff] (!%p279_p9)   ;;  %v2470_v15 = vld [vmem:[%s3132_s2 + $0x74] ss:$8 sps:$4 sm:$0xff] (!%p279_p9)   ;;  %v2472_v16 = vld [vmem:[%s3132_s2 + $0x70] ss:$8 sps:$4 sm:$0xff] (!%p279_p9)  }
  0x13   : > { %640 = vmatpush1.bf16.msra.mxu0 (!%p279_p9), %v2454_v3  ;;  %v2473_v17 = vld [vmem:[%s3132_s2 + $0x84] ss:$8 sps:$4 sm:$0xff] (!%p279_p9)   ;;  %v2475_v18 = vld [vmem:[%s3132_s2 + $0x80] ss:$8 sps:$4 sm:$0xff] (!%p279_p9)   ;;  %v2476_v19 = vld [vmem:[%s3132_s2 + $0x94] ss:$8 sps:$4 sm:$0xff] (!%p279_p9)  }
  0x14   : > { %641 = vmatprep.subr.bf16.mxu0 (!%p279_p9), %v2455_v4  ;;  %v2478_v20 = vld [vmem:[%s3132_s2 + $0x90] ss:$8 sps:$4 sm:$0xff] (!%p279_p9)   ;;  %v2479_v21 = vld [vmem:[%s3132_s2 + $0xa4] ss:$8 sps:$4 sm:$0xff] (!%p279_p9)   ;;  %v2481_v22 = vld [vmem:[%s3132_s2 + $0xa0] ss:$8 sps:$4 sm:$0xff] (!%p279_p9)  }
  0x15   : > { %s3146_s10 = smov (!%p319_p10, %s1858_s10), 63  ;;  %v2482_v23 = vld [vmem:[%s3132_s2 + $0xb4] ss:$8 sps:$4 sm:$0xff]   ;;  %v2484_v24 = vld [vmem:[%s3132_s2 + $0xb0] ss:$8 sps:$4 sm:$0xff]   ;;  %s1975_s13 = sshll.u32 %s2679_s9, 10 }
  0x16   : > { %s1859_s12 = sshll.u32 %s3146_s10, 3  ;;  %v2485_v25 = vld [vmem:[%s3132_s2 + $0xc4] ss:$8 sps:$4 sm:$0xff]   ;;  %v2487_v26 = vld [vmem:[%s3132_s2 + $0xc0] ss:$8 sps:$4 sm:$0xff]   ;;  %s3082_s21 = scalar_lea.hbm %s3138_s8, %s1975_s13 }
  0x17   : > { %642 = vmatpush1.bf16.msra.mxu0 %v2457_v5  ;;  %s2751_s20 = scalar_lea.vmem %s3131_s1, %s1859_s12  ;;  %v2488_v27 = vld [vmem:[%s3132_s2 + $0xd4] ss:$8 sps:$4 sm:$0xff]   ;;  %v2490_v28 = vld [vmem:[%s3132_s2 + $0xd0] ss:$8 sps:$4 sm:$0xff]   ;;  %v2491_v29 = vld [vmem:[%s3132_s2 + $0xe4] ss:$8 sps:$4 sm:$0xff]   ;;  %s2834_s23 = scalar_lea.vmem %s3130_s0, %s1859_s12 }
  0x18   : > { %643 = vmatprep.subr.bf16.mxu0 %v2458_v6  ;;  %v2499_v13 = vld [vmem:[%s2751_s20 + $0x4] ss:$8 sps:$4 sm:$0xff]   ;;  %v2493_v30 = vld [vmem:[%s3132_s2 + $0xe0] ss:$8 sps:$4 sm:$0xff]   ;;  %v2494_v31 = vld [vmem:[%s3132_s2 + $0xf4] ss:$8 sps:$4 sm:$0xff]  }
  0x19   : > { %669 = vmatprep.mubr.bf16.mxu0 %v2499_v13  ;;  %v2496_v32 = vld [vmem:[%s3132_s2 + $0xf0] ss:$8 sps:$4 sm:$0xff]   ;;  %v2497_v33 = vld [vmem:[%s2751_s20] ss:$8 sps:$4 sm:$0xff]   ;;  %v2500_v34 = vld [vmem:[%s2751_s20 + $0x14] ss:$8 sps:$4 sm:$0xff]  }
  0x1a   : > { %v2502_v35 = vld [vmem:[%s2751_s20 + $0x10] ss:$8 sps:$4 sm:$0xff]   ;;  %v2503_v36 = vld [vmem:[%s2751_s20 + $0x24] ss:$8 sps:$4 sm:$0xff]   ;;  %v2505_v37 = vld [vmem:[%s2751_s20 + $0x20] ss:$8 sps:$4 sm:$0xff]  }
  0x1b   : > { %644 = vmatpush1.bf16.msra.mxu0 %v2460_v7  ;;  %v2506_v38 = vld [vmem:[%s2751_s20 + $0x34] ss:$8 sps:$4 sm:$0xff]   ;;  %v2508_v39 = vld [vmem:[%s2751_s20 + $0x30] ss:$8 sps:$4 sm:$0xff]   ;;  %v2509_v40 = vld [vmem:[%s2751_s20 + $0x44] ss:$8 sps:$4 sm:$0xff]  }
  0x1c   : > { %645 = vmatprep.subr.bf16.mxu0 %v2461_v8  ;;  %v2511_v41 = vld [vmem:[%s2751_s20 + $0x40] ss:$8 sps:$4 sm:$0xff]   ;;  %v2512_v42 = vld [vmem:[%s2751_s20 + $0x54] ss:$8 sps:$4 sm:$0xff]   ;;  %v2514_v43 = vld [vmem:[%s2751_s20 + $0x50] ss:$8 sps:$4 sm:$0xff]  }
  0x1d   : > { %v2515_v44 = vld [vmem:[%s2751_s20 + $0x64] ss:$8 sps:$4 sm:$0xff]   ;;  %v2517_v45 = vld [vmem:[%s2751_s20 + $0x60] ss:$8 sps:$4 sm:$0xff]   ;;  %v2518_v46 = vld [vmem:[%s2751_s20 + $0x74] ss:$8 sps:$4 sm:$0xff]  }
  0x1e   : > { %v2520_v47 = vld [vmem:[%s2751_s20 + $0x70] ss:$8 sps:$4 sm:$0xff]   ;;  %v2838_v49 = vld [vmem:[%s2834_s23] sm:$0xff]  ;;  %s315_s20 = sand.u32 1, %s2599_s28   ;;  %s2610_s10 = smov [#allocation2]  }
  0x1f   : > { %646 = vmatpush1.bf16.msra.mxu0 %v2463_v9  ;;  %s1857_s25 = sshll.u32 %s315_s20, 6  ;;  %s3089_s22 = scalar_lea.sflag [#allocation3], %s315_s20 }
  0x20   : > { %647 = vmatprep.subr.bf16.mxu0 %v2464_v10  ;;  %s3068_s26 = scalar_lea.vmem [#allocation2], %s1857_s25  ;;  %s2549_s12 = sshll.u32 %s2610_s10, 4  ;;  %s2550_s12 = int_to_ptr.vmem [resolvable:$false] %s2549_s12 }
  0x21   : > { %s1779_s17 = sshll.u32 %s3068_s26, 4  ;;  %s2551_s24 = scalar_lea.vmem %s2550_s12, 2048  ;;  %s3084_s17 = int_to_ptr.vmem [resolvable:$true] %s1779_s17 }
  0x22   : > { %s2545_s9 = scalar_lea.vmem %s3084_s17, 1024  ;;  %p2552_p0 = scmp.lt.s32.totalorder %s3084_s17, %s2550_s12 }
  0x23   : > { %648 = vmatpush1.bf16.msra.mxu0 %v2466_v11  ;;  %p2546_p11 = scmp.ne.s32.totalorder %s3084_s17, %s2545_s9  ;;  %p2553_p1 = scmp.lt.s32.totalorder %s2551_s24, %s2545_s9 }
  0x24   : > { %649 = vmatprep.subr.bf16.mxu0 %v2467_v12 }
  0x25   : > { %p2547_p12 = pnand %p2546_p11, %p2696_p5  ;;  %p2554_p2 = por %p2553_p1, %p2552_p0 }
  0x27   : > { %650 = vmatpush1.bf16.msra.mxu0 %v2469_v14  ;;  %p2548_p13 = pneg %p2547_p12 }
  0x28   : > { %651 = vmatprep.subr.bf16.mxu0 %v2470_v15 }
  0x29   : > { %p2555_p3 = pnand %p2554_p2, %p2548_p13 }
  0x2b   : > { %652 = vmatpush1.bf16.msra.mxu0 %v2472_v16 }
  0x2c   : > { %653 = vmatprep.subr.bf16.mxu0 %v2473_v17 }
  0x2f   : > { %654 = vmatpush1.bf16.msra.mxu0 %v2475_v18 }
  0x30   : > { %655 = vmatprep.subr.bf16.mxu0 %v2476_v19 }
  0x33   : > { %656 = vmatpush1.bf16.msra.mxu0 %v2478_v20 }
  0x34   : > { %657 = vmatprep.subr.bf16.mxu0 %v2479_v21 }
  0x37   : > { %658 = vmatpush1.bf16.msra.mxu0 %v2481_v22 }
  0x38   : > { %659 = vmatprep.subr.bf16.mxu0 %v2482_v23 }
  0x3b   : > { %660 = vmatpush1.bf16.msra.mxu0 %v2484_v24 }
  0x3c   : > { %661 = vmatprep.subr.bf16.mxu0 %v2485_v25 }
  0x3f   : > { %662 = vmatpush1.bf16.msra.mxu0 %v2487_v26 }
  0x40   : > { %663 = vmatprep.subr.bf16.mxu0 %v2488_v27 }
  0x43   : > { %664 = vmatpush1.bf16.msra.mxu0 %v2490_v28 }
  0x44   : > { %665 = vmatprep.subr.bf16.mxu0 %v2491_v29 }
  0x47   : > { %666 = vmatpush1.bf16.msra.mxu0 %v2493_v30 }
  0x48   : > { %667 = vmatprep.subr.bf16.mxu0 %v2494_v31 }
  0x4b   : > { %668 = vmatpush1.bf16.msra.mxu0 %v2496_v32 }
  0x4e   : > { %670 = vmatmul.mubr.bf16.vlgmr.msra.gmra.mrb[0].mxu0 %v2497_v33 }
  0x4f   : > { %679 = vmatprep.mubr.bf16.mxu0 %v2500_v34  ;;  %v2521_v34 = vld [vmem:[%s3134_s4 + $0x40] sm:$0xff]  }
  0x56   : > { %680 = vmatmul.mubr.bf16.gmra.mrb[4].mxu0 %v2502_v35  ;;  %v2522_v35 = vld [vmem:[%s3134_s4] sm:$0xff]  }
  0x57   : > { %689 = vmatprep.mubr.bf16.mxu0 %v2503_v36  ;;  %v2523_v36 = vld [vmem:[%s3134_s4 + $0x48] sm:$0xff]  }
  0x5e   : > { %690 = vmatmul.mubr.bf16.gmra.mrb[8].mxu0 %v2505_v37  ;;  %v2853_v37 = vld [vmem:[%s2834_s23 + $0x8] sm:$0xff] }
  0x5f   : > { %699 = vmatprep.mubr.bf16.mxu0 %v2506_v38  ;;  %v2524_v38 = vld [vmem:[%s3134_s4 + $0x8] sm:$0xff]  }
  0x66   : > { %700 = vmatmul.mubr.bf16.gmra.mrb[12].mxu0 %v2508_v39  ;;  %v2525_v39 = vld [vmem:[%s3134_s4 + $0x50] sm:$0xff]  }
  0x67   : > { %709 = vmatprep.mubr.bf16.mxu0 %v2509_v40  ;;  %v2864_v40 = vld [vmem:[%s2834_s23 + $0x10] sm:$0xff] }
  0x6e   : > { %710 = vmatmul.mubr.bf16.gmra.mrb[16].mxu0 %v2511_v41  ;;  %v2526_v41 = vld [vmem:[%s3134_s4 + $0x10] sm:$0xff]  }
  0x6f   : > { %719 = vmatprep.mubr.bf16.mxu0 %v2512_v42  ;;  %v2527_v42 = vld [vmem:[%s3134_s4 + $0x58] sm:$0xff]  }
  0x76   : > { %720 = vmatmul.mubr.bf16.gmra.mrb[20].mxu0 %v2514_v43  ;;  %v2875_v43 = vld [vmem:[%s2834_s23 + $0x18] sm:$0xff] }
  0x77   : > { %729 = vmatprep.mubr.bf16.mxu0 %v2515_v44  ;;  %v2528_v44 = vld [vmem:[%s3134_s4 + $0x18] sm:$0xff]  }
  0x7e   : > { %730 = vmatmul.mubr.bf16.gmra.mrb[24].mxu0 %v2517_v45  ;;  %v2529_v45 = vld [vmem:[%s3134_s4 + $0x60] sm:$0xff]  }
  0x7f   : > { %739 = vmatprep.mubr.bf16.mxu0 %v2518_v46  ;;  %v2886_v46 = vld [vmem:[%s2834_s23 + $0x20] sm:$0xff] }
  0x86   : > { %740 = vmatmul.mubr.bf16.gmra.mrb[28].mxu0 %v2520_v47  ;;  %v2530_v47 = vld [vmem:[%s3134_s4 + $0x20] sm:$0xff]  }
  0x87   : > { %2199 = vmatprep.mubr.f32.mxu0 %v2838_v49 }
 0x121   : > { %v671_v50 = vpop.f32.mrb[0].mxu0 }
 0x122   : > { %v673_v51 = vpop.f32.mrb[1].mxu0 }
 0x123   : > { %v675_v52 = vpop.f32.mrb[2].mxu0 }
 0x124   : > { %v2313_v53 = vpack.c.bf16 %v675_v52, %v671_v50  ;;  %v677_v54 = vpop.f32.mrb[3].mxu0  ;;  %v2894_v50 = vld [vmem:[%s2834_s23 + $0x28] sm:$0xff]  ;;  %v2904_v52 = vld [vmem:[%s2834_s23 + $0x38] sm:$0xff] }
 0x125   : > { %v2311_v55 = vpack.c.bf16 %v677_v54, %v673_v51  ;;  %v2899_v51 = vld [vmem:[%s2834_s23 + $0x30] sm:$0xff]  ;;  %v2914_v54 = vld [vmem:[%s2834_s23 + $0x48] sm:$0xff] }
 0x127   : > { %2312 = vmatprep.subr.bf16.mxu1 %v2311_v55  ;;  %v2919_v55 = vld [vmem:[%s2834_s23 + $0x50] sm:$0xff] }
 0x128   : > { %2314 = vmatpush1.bf16.msra.mxu1 %v2313_v53  ;;  %v2909_v53 = vld [vmem:[%s2834_s23 + $0x40] sm:$0xff] }
 0x129   : > { %v681_v56 = vpop.f32.mrb[4].mxu0 }
 0x12a   : > { %v683_v57 = vpop.f32.mrb[5].mxu0 }
 0x12b   : > { %v685_v58 = vpop.f32.mrb[6].mxu0 }
 0x12c   : > { %v2317_v59 = vpack.c.bf16 %v685_v58, %v681_v56  ;;  %v687_v60 = vpop.f32.mrb[7].mxu0  ;;  %v2924_v56 = vld [vmem:[%s2834_s23 + $0x58] sm:$0xff]  ;;  %v2934_v58 = vld [vmem:[%s2834_s23 + $0x68] sm:$0xff] }
 0x12d   : > { %v2315_v61 = vpack.c.bf16 %v687_v60, %v683_v57  ;;  %v2929_v57 = vld [vmem:[%s2834_s23 + $0x60] sm:$0xff]  ;;  %v2944_v60 = vld [vmem:[%s2834_s23 + $0x78] sm:$0xff] }
 0x12f   : > { %2316 = vmatprep.subr.bf16.mxu1 %v2315_v61  ;;  %v2531_v61 = vld [vmem:[%s3134_s4 + $0x68] sm:$0xff]  }
 0x130   : > { %2318 = vmatpush1.bf16.msra.mxu1 %v2317_v59  ;;  %v2939_v59 = vld [vmem:[%s2834_s23 + $0x70] sm:$0xff] }
 0x131   : > { %v691_v62 = vpop.f32.mrb[8].mxu0 }
 0x132   : > { %v693_v63 = vpop.f32.mrb[9].mxu0 }
 0x133   : > { %v695_v0 = vpop.f32.mrb[10].mxu0 }
 0x134   : > { %v2321_v1 = vpack.c.bf16 %v695_v0, %v691_v62  ;;  %v697_v2 = vpop.f32.mrb[11].mxu0  ;;  %v2532_v62 = vld [vmem:[%s3134_s4 + $0x28] sm:$0xff]   ;;  %v2535_v0 = vld [vmem:[%s3134_s4 + $0x78] sm:$0xff]  }
 0x135   : > { %v2319_v3 = vpack.c.bf16 %v697_v2, %v693_v63  ;;  %v2533_v63 = vld [vmem:[%s3134_s4 + $0x70] sm:$0xff]   ;;  %v752_v2 = vlaneseq }
 0x137   : > { %2320 = vmatprep.subr.bf16.mxu1 %v2319_v3  ;;  %v753_v3 = vshrl.u32 %v752_v2, 7 }
 0x138   : > { %2322 = vmatpush1.bf16.msra.mxu1 %v2321_v1  ;;  %v2536_v1 = vld [vmem:[%s3134_s4 + $0x38] sm:$0xff]  }
 0x139   : > { %v701_v4 = vpop.f32.mrb[12].mxu0 }
 0x13a   : > { %v703_v5 = vpop.f32.mrb[13].mxu0 }
 0x13b   : > { %v705_v6 = vpop.f32.mrb[14].mxu0 }
 0x13c   : > { %v2325_v7 = vpack.c.bf16 %v705_v6, %v701_v4  ;;  %v707_v8 = vpop.f32.mrb[15].mxu0  ;;  %v754_v4 = vsub.s32 0, %v753_v3  ;;  %v758_v6 = vsub.s32 1, %v753_v3 }
 0x13d   : > { %v2323_v9 = vpack.c.bf16 %v707_v8, %v703_v5  ;;  %v750_v5 = vld [vmem:[%s3133_s3] sm:$0x3] }
 0x13f   : > { %2324 = vmatprep.subr.bf16.mxu1 %v2323_v9  ;;  %v2970_v9 = vrot.slane %v750_v5, %v758_v6 }
 0x140   : > { %2326 = vmatpush1.bf16.msra.mxu1 %v2325_v7  ;;  %v2968_v7 = vrot.slane %v750_v5, %v754_v4 }
 0x141   : > { %v711_v10 = vpop.f32.mrb[16].mxu0 }
 0x142   : > { %v713_v11 = vpop.f32.mrb[17].mxu0 }
 0x143   : > { %v715_v12 = vpop.f32.mrb[18].mxu0 }
 0x144   : > { %v2329_v13 = vpack.c.bf16 %v715_v12, %v711_v10  ;;  %v717_v14 = vpop.f32.mrb[19].mxu0 }
 0x145   : > { %v2327_v15 = vpack.c.bf16 %v717_v14, %v713_v11 }
 0x147   : > { %2328 = vmatprep.subr.bf16.mxu1 %v2327_v15 }
 0x148   : > { %2330 = vmatpush1.bf16.msra.mxu1 %v2329_v13 }
 0x149   : > { %v721_v16 = vpop.f32.mrb[20].mxu0 }
 0x14a   : > { %v723_v17 = vpop.f32.mrb[21].mxu0 }
 0x14b   : > { %v725_v18 = vpop.f32.mrb[22].mxu0 }
 0x14c   : > { %v2333_v19 = vpack.c.bf16 %v725_v18, %v721_v16  ;;  %v727_v20 = vpop.f32.mrb[23].mxu0 }
 0x14d   : > { %v2331_v21 = vpack.c.bf16 %v727_v20, %v723_v17 }
 0x14f   : > { %2332 = vmatprep.subr.bf16.mxu1 %v2331_v21 }
 0x150   : > { %2334 = vmatpush1.bf16.msra.mxu1 %v2333_v19 }
 0x151   : > { %v731_v22 = vpop.f32.mrb[24].mxu0 }
 0x152   : > { %v733_v23 = vpop.f32.mrb[25].mxu0 }
 0x153   : > { %v735_v24 = vpop.f32.mrb[26].mxu0 }
 0x154   : > { %v2337_v25 = vpack.c.bf16 %v735_v24, %v731_v22  ;;  %v737_v26 = vpop.f32.mrb[27].mxu0 }
 0x155   : > { %v2335_v27 = vpack.c.bf16 %v737_v26, %v733_v23 }
 0x157   : > { %2336 = vmatprep.subr.bf16.mxu1 %v2335_v27 }
 0x158   : > { %2338 = vmatpush1.bf16.msra.mxu1 %v2337_v25 }
 0x159   : > { %v741_v28 = vpop.f32.mrb[28].mxu0 }
 0x15a   : > { %v743_v29 = vpop.f32.mrb[29].mxu0 }
 0x15b   : > { %v745_v30 = vpop.f32.mrb[30].mxu0 }
 0x15c   : > { %v2341_v31 = vpack.c.bf16 %v745_v30, %v741_v28  ;;  %v747_v32 = vpop.f32.mrb[31].mxu0 }
 0x15d   : > { %v2339_v33 = vpack.c.bf16 %v747_v32, %v743_v29 }
 0x15f   : > { %2340 = vmatprep.subr.bf16.mxu1 %v2339_v33 }
 0x160   : > { %2342 = vmatpush1.bf16.msra.mxu1 %v2341_v31 }
 0x161   : > { %2023 = vmatprep.subr.bf16.mxu1 %v2521_v34 }
 0x163   : > { %827 = vmatmul.mubr.f32.vlgmr.msra.gmra.mrb[0].mxu1 %v2838_v49 }
 0x164   : > { %832 = vmatprep.mubr.f32.mxu1 %v2609_v48  ;;  %2024 = vmatpush3.bf16.msra.mxu1 %v2522_v35 }
 0x165   : > { %2025 = vmatprep.subr.bf16.mxu1 %v2523_v36 }
 0x167   : > { %833 = vmatmul.mubr.f32.gmra.mrb[2].mxu1 %v2853_v37 }
 0x168   : > { %838 = vmatprep.mubr.f32.mxu1 %v2609_v48  ;;  %2026 = vmatpush3.bf16.msra.mxu1 %v2524_v38 }
 0x169   : > { %2027 = vmatprep.subr.bf16.mxu1 %v2525_v39 }
 0x16b   : > { %839 = vmatmul.mubr.f32.gmra.mrb[4].mxu1 %v2864_v40 }
 0x16c   : > { %844 = vmatprep.mubr.f32.mxu1 %v2609_v48  ;;  %2028 = vmatpush3.bf16.msra.mxu1 %v2526_v41 }
 0x16d   : > { %2029 = vmatprep.subr.bf16.mxu1 %v2527_v42 }
 0x16f   : > { %845 = vmatmul.mubr.f32.gmra.mrb[6].mxu1 %v2875_v43 }
 0x170   : > { %850 = vmatprep.mubr.f32.mxu1 %v2609_v48  ;;  %2030 = vmatpush3.bf16.msra.mxu1 %v2528_v44 }
 0x171   : > { %2031 = vmatprep.subr.bf16.mxu1 %v2529_v45 }
 0x173   : > { %851 = vmatmul.mubr.f32.gmra.mrb[8].mxu1 %v2886_v46 }
 0x174   : > { %856 = vmatprep.mubr.f32.mxu1 %v2609_v48  ;;  %2032 = vmatpush3.bf16.msra.mxu1 %v2530_v47 }
 0x175   : > { %2033 = vmatprep.subr.bf16.mxu1 %v2531_v61 }
 0x177   : > { %857 = vmatmul.mubr.f32.gmra.mrb[10].mxu1 %v2894_v50 }
 0x178   : > { %862 = vmatprep.mubr.f32.mxu1 %v2609_v48  ;;  %2034 = vmatpush3.bf16.msra.mxu1 %v2532_v62 }
 0x179   : > { %2035 = vmatprep.subr.bf16.mxu1 %v2533_v63 }
 0x17b   : > { %863 = vmatmul.mubr.f32.gmra.mrb[12].mxu1 %v2899_v51 }
 0x17c   : > { %868 = vmatprep.mubr.f32.mxu1 %v2609_v48 }
 0x17f   : > { %869 = vmatmul.mubr.f32.gmra.mrb[14].mxu1 %v2904_v52 }
 0x180   : > { %874 = vmatprep.mubr.f32.mxu1 %v2609_v48 }
 0x183   : > { %875 = vmatmul.mubr.f32.gmra.mrb[16].mxu1 %v2909_v53 }
 0x184   : > { %880 = vmatprep.mubr.f32.mxu1 %v2609_v48 }
 0x187   : > { %881 = vmatmul.mubr.f32.gmra.mrb[18].mxu1 %v2914_v54 }
 0x188   : > { %886 = vmatprep.mubr.f32.mxu1 %v2609_v48 }
 0x18b   : > { %887 = vmatmul.mubr.f32.gmra.mrb[20].mxu1 %v2919_v55 }
 0x18c   : > { %892 = vmatprep.mubr.f32.mxu1 %v2609_v48 }
 0x18f   : > { %893 = vmatmul.mubr.f32.gmra.mrb[22].mxu1 %v2924_v56 }
 0x190   : > { %898 = vmatprep.mubr.f32.mxu1 %v2609_v48 }
 0x193   : > { %899 = vmatmul.mubr.f32.gmra.mrb[24].mxu1 %v2929_v57 }
 0x194   : > { %904 = vmatprep.mubr.f32.mxu1 %v2609_v48 }
 0x197   : > { %905 = vmatmul.mubr.f32.gmra.mrb[26].mxu1 %v2934_v58 }
 0x198   : > { %910 = vmatprep.mubr.f32.mxu1 %v2609_v48 }
 0x19b   : > { %911 = vmatmul.mubr.f32.gmra.mrb[28].mxu1 %v2939_v59 }
 0x19c   : > { %916 = vmatprep.mubr.f32.mxu1 %v2609_v48  ;;  %v2534_v48 = vld [vmem:[%s3134_s4 + $0x30] sm:$0xff]  }
 0x19d   : > { %2036 = vmatpush3.bf16.msra.mxu1 %v2534_v48 }
 0x19e   : > { %2037 = vmatprep.subr.bf16.mxu1 %v2535_v0 }
 0x19f   : > { %917 = vmatmul.mubr.f32.gmra.mrb[30].mxu1 %v2944_v60 }
 0x1a1   : > { %2038 = vmatpush3.bf16.msra.mxu1 %v2536_v1 }
 0x236   : > { %v828_v8 = vpop.f32.mrb[0].mxu1 }
 0x237   : > { %v830_v10 = vpop.f32.mrb[1].mxu1  ;;  %v829_v11 = vadd.f32 %v828_v8, %v2968_v7 }
 0x238   : > { %v831_v12 = vadd.f32 %v830_v10, %v2970_v9 }
 0x239   : > { %v923_v17 = vmax.f32 %v829_v11, 0.0 }
 0x23a   : > { %v834_v13 = vpop.f32.mrb[2].mxu1  ;;  %v924_v19 = vmax.f32 %v831_v12, 0.0 }
 0x23b   : > { %v835_v14 = vadd.f32 %v834_v13, %v2968_v7  ;;  %v836_v15 = vpop.f32.mrb[3].mxu1 }
 0x23c   : > { %v837_v16 = vadd.f32 %v836_v15, %v2970_v9 }
 0x23d   : > { %v925_v18 = vmax.f32 %v835_v14, 0.0 }
 0x23e   : > { %v926_v20 = vmax.f32 %v837_v16, 0.0  ;;  %v840_v21 = vpop.f32.mrb[4].mxu1 }
 0x23f   : > { %v955_v22 = vpack.c.bf16 %v925_v18, %v923_v17  ;;  %v842_v23 = vpop.f32.mrb[5].mxu1  ;;  %v841_v25 = vadd.f32 %v840_v21, %v2968_v7 }
 0x240   : > { %v956_v24 = vpack.c.bf16 %v926_v20, %v924_v19  ;;  %v843_v26 = vadd.f32 %v842_v23, %v2970_v9 }
 0x241   : > { %v927_v31 = vmax.f32 %v841_v25, 0.0 }
 0x242   : > { %v846_v27 = vpop.f32.mrb[6].mxu1  ;;  %1131 = vmatprep.mubr.bf16.mxu1 %v956_v24  ;;  %v928_v33 = vmax.f32 %v843_v26, 0.0 }
 0x243   : > { %v847_v28 = vadd.f32 %v846_v27, %v2968_v7  ;;  %v848_v29 = vpop.f32.mrb[7].mxu1  ;;  %1132 = vmatmul.mubr.bf16.vlgmr.msra.gmra.mrb[32].mxu1 %v955_v22 }
 0x244   : > { %v849_v30 = vadd.f32 %v848_v29, %v2970_v9 }
 0x245   : > { %v929_v32 = vmax.f32 %v847_v28, 0.0 }
 0x246   : > { %v930_v34 = vmax.f32 %v849_v30, 0.0  ;;  %v852_v35 = vpop.f32.mrb[8].mxu1 }
 0x247   : > { %v957_v36 = vpack.c.bf16 %v929_v32, %v927_v31  ;;  %v854_v38 = vpop.f32.mrb[9].mxu1  ;;  %v853_v41 = vadd.f32 %v852_v35, %v2968_v7 }
 0x248   : > { %v958_v39 = vpack.c.bf16 %v930_v34, %v928_v33  ;;  %v855_v42 = vadd.f32 %v854_v38, %v2970_v9 }
 0x249   : > { %v931_v62 = vmax.f32 %v853_v41, 0.0 }
 0x24a   : > { %v858_v44 = vpop.f32.mrb[10].mxu1  ;;  %1139 = vmatprep.mubr.bf16.mxu1 %v958_v39  ;;  %v932_v48 = vmax.f32 %v855_v42, 0.0 }
 0x24b   : > { %v859_v45 = vadd.f32 %v858_v44, %v2968_v7  ;;  %v860_v47 = vpop.f32.mrb[11].mxu1  ;;  %1140 = vmatmul.mubr.bf16.gmra.mrb[36].mxu1 %v957_v36 }
 0x24c   : > { %v861_v61 = vadd.f32 %v860_v47, %v2970_v9 }
 0x24d   : > { %v933_v63 = vmax.f32 %v859_v45, 0.0 }
 0x24e   : > { %v934_v0 = vmax.f32 %v861_v61, 0.0  ;;  %v864_v1 = vpop.f32.mrb[12].mxu1 }
 0x24f   : > { %v959_v2 = vpack.c.bf16 %v933_v63, %v931_v62  ;;  %v866_v3 = vpop.f32.mrb[13].mxu1  ;;  %v865_v5 = vadd.f32 %v864_v1, %v2968_v7 }
 0x250   : > { %v960_v4 = vpack.c.bf16 %v934_v0, %v932_v48  ;;  %v867_v6 = vadd.f32 %v866_v3, %v2970_v9 }
 0x251   : > { %v935_v13 = vmax.f32 %v865_v5, 0.0 }
 0x252   : > { %v870_v8 = vpop.f32.mrb[14].mxu1  ;;  %1147 = vmatprep.mubr.bf16.mxu1 %v960_v4  ;;  %v936_v15 = vmax.f32 %v867_v6, 0.0 }
 0x253   : > { %v871_v10 = vadd.f32 %v870_v8, %v2968_v7  ;;  %v872_v11 = vpop.f32.mrb[15].mxu1  ;;  %1148 = vmatmul.mubr.bf16.gmra.mrb[40].mxu1 %v959_v2 }
 0x254   : > { %v873_v12 = vadd.f32 %v872_v11, %v2970_v9 }
 0x255   : > { %v937_v14 = vmax.f32 %v871_v10, 0.0 }
 0x256   : > { %v938_v16 = vmax.f32 %v873_v12, 0.0  ;;  %v876_v17 = vpop.f32.mrb[16].mxu1 }
 0x257   : > { %v961_v18 = vpack.c.bf16 %v937_v14, %v935_v13  ;;  %v878_v19 = vpop.f32.mrb[17].mxu1  ;;  %v877_v21 = vadd.f32 %v876_v17, %v2968_v7 }
 0x258   : > { %v962_v20 = vpack.c.bf16 %v938_v16, %v936_v15  ;;  %v879_v22 = vadd.f32 %v878_v19, %v2970_v9 }
 0x259   : > { %v939_v27 = vmax.f32 %v877_v21, 0.0 }
 0x25a   : > { %v882_v23 = vpop.f32.mrb[18].mxu1  ;;  %1155 = vmatprep.mubr.bf16.mxu1 %v962_v20  ;;  %v940_v29 = vmax.f32 %v879_v22, 0.0 }
 0x25b   : > { %v883_v24 = vadd.f32 %v882_v23, %v2968_v7  ;;  %v884_v25 = vpop.f32.mrb[19].mxu1  ;;  %1156 = vmatmul.mubr.bf16.gmra.mrb[44].mxu1 %v961_v18 }
 0x25c   : > { %v885_v26 = vadd.f32 %v884_v25, %v2970_v9 }
 0x25d   : > { %v941_v28 = vmax.f32 %v883_v24, 0.0 }
 0x25e   : > { %v942_v30 = vmax.f32 %v885_v26, 0.0  ;;  %v888_v31 = vpop.f32.mrb[20].mxu1 }
 0x25f   : > { %v963_v32 = vpack.c.bf16 %v941_v28, %v939_v27  ;;  %v890_v33 = vpop.f32.mrb[21].mxu1  ;;  %v889_v35 = vadd.f32 %v888_v31, %v2968_v7 }
 0x260   : > { %v964_v34 = vpack.c.bf16 %v942_v30, %v940_v29  ;;  %v891_v36 = vadd.f32 %v890_v33, %v2970_v9 }
 0x261   : > { %v943_v44 = vmax.f32 %v889_v35, 0.0 }
 0x262   : > { %v894_v38 = vpop.f32.mrb[22].mxu1  ;;  %1163 = vmatprep.mubr.bf16.mxu1 %v964_v34  ;;  %v944_v47 = vmax.f32 %v891_v36, 0.0 }
 0x263   : > { %v895_v39 = vadd.f32 %v894_v38, %v2968_v7  ;;  %v896_v41 = vpop.f32.mrb[23].mxu1  ;;  %1164 = vmatmul.mubr.bf16.gmra.mrb[48].mxu1 %v963_v32 }
 0x264   : > { %v897_v42 = vadd.f32 %v896_v41, %v2970_v9 }
 0x265   : > { %v945_v45 = vmax.f32 %v895_v39, 0.0 }
 0x266   : > { %v946_v61 = vmax.f32 %v897_v42, 0.0  ;;  %v900_v62 = vpop.f32.mrb[24].mxu1 }
 0x267   : > { %v965_v63 = vpack.c.bf16 %v945_v45, %v943_v44  ;;  %v902_v48 = vpop.f32.mrb[25].mxu1  ;;  %v901_v1 = vadd.f32 %v900_v62, %v2968_v7 }
 0x268   : > { %v966_v0 = vpack.c.bf16 %v946_v61, %v944_v47  ;;  %v903_v2 = vadd.f32 %v902_v48, %v2970_v9 }
 0x269   : > { %v947_v8 = vmax.f32 %v901_v1, 0.0 }
 0x26a   : > { %v906_v3 = vpop.f32.mrb[26].mxu1  ;;  %1171 = vmatprep.mubr.bf16.mxu1 %v966_v0  ;;  %v948_v11 = vmax.f32 %v903_v2, 0.0 }
 0x26b   : > { %v907_v4 = vadd.f32 %v906_v3, %v2968_v7  ;;  %v908_v5 = vpop.f32.mrb[27].mxu1  ;;  %1172 = vmatmul.mubr.bf16.gmra.mrb[52].mxu1 %v965_v63 }
 0x26c   : > { %v909_v6 = vadd.f32 %v908_v5, %v2970_v9 }
 0x26d   : > { %v949_v10 = vmax.f32 %v907_v4, 0.0 }
 0x26e   : > { %v950_v12 = vmax.f32 %v909_v6, 0.0  ;;  %v912_v13 = vpop.f32.mrb[28].mxu1 }
 0x26f   : > { %v967_v14 = vpack.c.bf16 %v949_v10, %v947_v8  ;;  %v914_v15 = vpop.f32.mrb[29].mxu1  ;;  %v913_v17 = vadd.f32 %v912_v13, %v2968_v7 }
 0x270   : > { %v968_v16 = vpack.c.bf16 %v950_v12, %v948_v11  ;;  %v915_v18 = vadd.f32 %v914_v15, %v2970_v9 }
 0x271   : > { %v951_v23 = vmax.f32 %v913_v17, 0.0 }
 0x272   : > { %v918_v19 = vpop.f32.mrb[30].mxu1  ;;  %1179 = vmatprep.mubr.bf16.mxu1 %v968_v16  ;;  %v952_v25 = vmax.f32 %v915_v18, 0.0 }
 0x273   : > { %v919_v20 = vadd.f32 %v918_v19, %v2968_v7  ;;  %v920_v21 = vpop.f32.mrb[31].mxu1  ;;  %1180 = vmatmul.mubr.bf16.gmra.mrb[56].mxu1 %v967_v14 }
 0x274   : > { %v921_v22 = vadd.f32 %v920_v21, %v2970_v9 }
 0x275   : > { %v953_v24 = vmax.f32 %v919_v20, 0.0 }
 0x276   : > { %v954_v26 = vmax.f32 %v921_v22, 0.0 }
 0x277   : > { %v969_v27 = vpack.c.bf16 %v953_v24, %v951_v23 }
 0x278   : > { %v970_v28 = vpack.c.bf16 %v954_v26, %v952_v25 }
 0x27a   : > { %1187 = vmatprep.mubr.bf16.mxu1 %v970_v28 }
 0x27b   : > { %1188 = vmatmul.mubr.bf16.gmra.mrb[60].mxu1 %v969_v27 }
 0x27c   : > { %2287 = vmatprep.mubr.f32.mxu1 %v2838_v49 }
 0x316   : > { %v2039_v29 = vpop.f32.mrb[32].mxu1 }
 0x317   : > { %v2040_v30 = vpop.f32.mrb[33].mxu1 }
 0x318   : > { %v2041_v31 = vadd.f32 %v2040_v30, %v2039_v29  ;;  %v2042_v32 = vpop.f32.mrb[34].mxu1 }
 0x319   : > { %v2043_v33 = vpop.f32.mrb[35].mxu1 }
 0x31a   : > { %v2044_v7 = vadd.f32 %v2043_v33, %v2042_v32 }
 0x31c   : > { %v2343_v34 = vpack.c.bf16 %v2044_v7, %v2041_v31 }
 0x31e   : > { %v2045_v35 = vpop.f32.mrb[36].mxu1  ;;  %2344 = vmatprep.subr.bf16.mxu0 %v2343_v34 }
 0x31f   : > { %v2046_v9 = vpop.f32.mrb[37].mxu1  ;;  %2346 = vmatpush3.bf16.msra.mxu0 %v2343_v34 }
 0x320   : > { %v2047_v36 = vadd.f32 %v2046_v9, %v2045_v35  ;;  %v2048_v38 = vpop.f32.mrb[38].mxu1  ;;  %v2537_v35 = vld [vmem:[%s3136_s6] sm:$0xff]   ;;  %v2538_v9 = vld [vmem:[%s3136_s6 + $0x8] sm:$0xff]  }
 0x321   : > { %v2049_v39 = vpop.f32.mrb[39].mxu1 }
 0x322   : > { %v2050_v41 = vadd.f32 %v2049_v39, %v2048_v38  ;;  %v2540_v38 = vld [vmem:[%s3136_s6 + $0x18] sm:$0xff]   ;;  %v2541_v39 = vld [vmem:[%s3136_s6 + $0x20] sm:$0xff]  }
 0x324   : > { %v2347_v42 = vpack.c.bf16 %v2050_v41, %v2047_v36  ;;  %v2539_v36 = vld [vmem:[%s3136_s6 + $0x10] sm:$0xff]   ;;  %v2542_v41 = vld [vmem:[%s3136_s6 + $0x28] sm:$0xff]  }
 0x326   : > { %v2051_v44 = vpop.f32.mrb[40].mxu1  ;;  %2348 = vmatprep.subr.bf16.mxu0 %v2347_v42 }
 0x327   : > { %v2052_v45 = vpop.f32.mrb[41].mxu1  ;;  %2350 = vmatpush3.bf16.msra.mxu0 %v2347_v42  ;;  %v2543_v42 = vld [vmem:[%s3136_s6 + $0x30] sm:$0xff]  }
 0x328   : > { %v2053_v49 = vadd.f32 %v2052_v45, %v2051_v44  ;;  %v2054_v47 = vpop.f32.mrb[42].mxu1  ;;  %v2544_v44 = vld [vmem:[%s3136_s6 + $0x38] sm:$0xff]   ;;  %v1927_v45 = vld [vmem:[%s3135_s5] ss:$0 sm:$0xff] }
 0x329   : > { %v2055_v61 = vpop.f32.mrb[43].mxu1 }
 0x32a   : > { %v2056_v62 = vadd.f32 %v2055_v61, %v2054_v47 }
 0x32c   : > { %v2351_v63 = vpack.c.bf16 %v2056_v62, %v2053_v49 }
 0x32e   : > { %v2057_v48 = vpop.f32.mrb[44].mxu1  ;;  %2352 = vmatprep.subr.bf16.mxu0 %v2351_v63 }
 0x32f   : > { %v2058_v0 = vpop.f32.mrb[45].mxu1  ;;  %2354 = vmatpush3.bf16.msra.mxu0 %v2351_v63 }
 0x330   : > { %v2059_v1 = vadd.f32 %v2058_v0, %v2057_v48  ;;  %v2060_v2 = vpop.f32.mrb[46].mxu1 }
 0x331   : > { %v2061_v3 = vpop.f32.mrb[47].mxu1 }
 0x332   : > { %v2062_v4 = vadd.f32 %v2061_v3, %v2060_v2 }
 0x334   : > { %v2355_v5 = vpack.c.bf16 %v2062_v4, %v2059_v1 }
 0x336   : > { %v2063_v6 = vpop.f32.mrb[48].mxu1  ;;  %2356 = vmatprep.subr.bf16.mxu0 %v2355_v5 }
 0x337   : > { %v2064_v8 = vpop.f32.mrb[49].mxu1  ;;  %2358 = vmatpush3.bf16.msra.mxu0 %v2355_v5 }
 0x338   : > { %v2065_v10 = vadd.f32 %v2064_v8, %v2063_v6  ;;  %v2066_v11 = vpop.f32.mrb[50].mxu1 }
 0x339   : > { %v2067_v12 = vpop.f32.mrb[51].mxu1 }
 0x33a   : > { %v2068_v13 = vadd.f32 %v2067_v12, %v2066_v11 }
 0x33c   : > { %v2359_v14 = vpack.c.bf16 %v2068_v13, %v2065_v10 }
 0x33e   : > { %v2069_v15 = vpop.f32.mrb[52].mxu1  ;;  %2360 = vmatprep.subr.bf16.mxu0 %v2359_v14 }
 0x33f   : > { %v2070_v16 = vpop.f32.mrb[53].mxu1  ;;  %2362 = vmatpush3.bf16.msra.mxu0 %v2359_v14 }
 0x340   : > { %v2071_v17 = vadd.f32 %v2070_v16, %v2069_v15  ;;  %v2072_v18 = vpop.f32.mrb[54].mxu1 }
 0x341   : > { %v2073_v19 = vpop.f32.mrb[55].mxu1 }
 0x342   : > { %v2074_v20 = vadd.f32 %v2073_v19, %v2072_v18 }
 0x344   : > { %v2363_v21 = vpack.c.bf16 %v2074_v20, %v2071_v17 }
 0x346   : > { %v2075_v22 = vpop.f32.mrb[56].mxu1  ;;  %2364 = vmatprep.subr.bf16.mxu0 %v2363_v21 }
 0x347   : > { %v2076_v23 = vpop.f32.mrb[57].mxu1  ;;  %2366 = vmatpush3.bf16.msra.mxu0 %v2363_v21 }
 0x348   : > { %v2077_v24 = vadd.f32 %v2076_v23, %v2075_v22  ;;  %v2078_v25 = vpop.f32.mrb[58].mxu1 }
 0x349   : > { %v2079_v26 = vpop.f32.mrb[59].mxu1 }
 0x34a   : > { %v2080_v27 = vadd.f32 %v2079_v26, %v2078_v25 }
 0x34c   : > { %v2367_v28 = vpack.c.bf16 %v2080_v27, %v2077_v24 }
 0x34e   : > { %v2081_v29 = vpop.f32.mrb[60].mxu1  ;;  %2368 = vmatprep.subr.bf16.mxu0 %v2367_v28 }
 0x34f   : > { %v2082_v30 = vpop.f32.mrb[61].mxu1  ;;  %2370 = vmatpush3.bf16.msra.mxu0 %v2367_v28 }
 0x350   : > { %v2083_v31 = vadd.f32 %v2082_v30, %v2081_v29  ;;  %v2084_v32 = vpop.f32.mrb[62].mxu1 }
 0x351   : > { %v2085_v33 = vpop.f32.mrb[63].mxu1 }
 0x352   : > { %v2086_v7 = vadd.f32 %v2085_v33, %v2084_v32 }
 0x354   : > { %v2371_v34 = vpack.c.bf16 %v2086_v7, %v2083_v31 }
 0x356   : > { %2372 = vmatprep.subr.bf16.mxu0 %v2371_v34 }
 0x357   : > { %2374 = vmatpush3.bf16.msra.mxu0 %v2371_v34 }
 0x358   : > { %2223 = vmatprep.subr.bf16.mxu0 %v2537_v35 }
 0x35a   : > { %2200 = vmatmul.mubr.f32.vlgmr.msra.gmra.mrb[32].mxu0 %v2853_v37 }
 0x35b   : > { %2202 = vmatprep.mubr.f32.mxu0 %v2864_v40  ;;  %2224 = vmatpush3.bf16.msra.mxu0 %v2537_v35 }
 0x35c   : > { %2225 = vmatprep.subr.bf16.mxu0 %v2538_v9 }
 0x35e   : > { %2203 = vmatmul.mubr.f32.gmra.mrb[34].mxu0 %v2875_v43 }
 0x35f   : > { %2205 = vmatprep.mubr.f32.mxu0 %v2886_v46  ;;  %2226 = vmatpush3.bf16.msra.mxu0 %v2538_v9 }
 0x360   : > { %2227 = vmatprep.subr.bf16.mxu0 %v2539_v36 }
 0x362   : > { %2206 = vmatmul.mubr.f32.gmra.mrb[36].mxu0 %v2894_v50 }
 0x363   : > { %2208 = vmatprep.mubr.f32.mxu0 %v2899_v51  ;;  %2228 = vmatpush3.bf16.msra.mxu0 %v2539_v36 }
 0x364   : > { %2229 = vmatprep.subr.bf16.mxu0 %v2540_v38 }
 0x366   : > { %2209 = vmatmul.mubr.f32.gmra.mrb[38].mxu0 %v2904_v52 }
 0x367   : > { %2211 = vmatprep.mubr.f32.mxu0 %v2909_v53  ;;  %2230 = vmatpush3.bf16.msra.mxu0 %v2540_v38 }
 0x368   : > { %2231 = vmatprep.subr.bf16.mxu0 %v2541_v39 }
 0x36a   : > { %2212 = vmatmul.mubr.f32.gmra.mrb[40].mxu0 %v2914_v54 }
 0x36b   : > { %2214 = vmatprep.mubr.f32.mxu0 %v2919_v55  ;;  %2232 = vmatpush3.bf16.msra.mxu0 %v2541_v39 }
 0x36c   : > { %2233 = vmatprep.subr.bf16.mxu0 %v2542_v41 }
 0x36e   : > { %2215 = vmatmul.mubr.f32.gmra.mrb[42].mxu0 %v2924_v56 }
 0x36f   : > { %2217 = vmatprep.mubr.f32.mxu0 %v2929_v57  ;;  %2234 = vmatpush3.bf16.msra.mxu0 %v2542_v41 }
 0x370   : > { %2235 = vmatprep.subr.bf16.mxu0 %v2543_v42 }
 0x372   : > { %2218 = vmatmul.mubr.f32.gmra.mrb[44].mxu0 %v2934_v58 }
 0x373   : > { %2220 = vmatprep.mubr.f32.mxu0 %v2939_v59  ;;  %2236 = vmatpush3.bf16.msra.mxu0 %v2543_v42 }
 0x374   : > { %2237 = vmatprep.subr.bf16.mxu0 %v2544_v44 }
 0x376   : > { %2221 = vmatmul.mubr.f32.gmra.mrb[46].mxu0 %v2944_v60 }
 0x377   : > { %2238 = vmatpush3.bf16.msra.mxu0 %v2544_v44 }
 0x42d   : > { %v2201_v49 = vpop.f32.mrb[32].mxu0 }
 0x42e   : > { %v1275_v47 = vadd.f32 %v2201_v49, %v1927_v45  ;;  %v1269_v61 = vpop.f32.mrb[33].mxu0 }
 0x42f   : > { %v1270_v62 = vadd.f32 %v1927_v45, %v1269_v61 }
 0x430   : > { %v1349_v63 = vmax.f32 %v1275_v47, 0.0 }
 0x431   : > { %v1348_v48 = vmax.f32 %v1270_v62, 0.0  ;;  %v2204_v0 = vpop.f32.mrb[34].mxu0 }
 0x432   : > { %v1285_v1 = vadd.f32 %v2204_v0, %v1927_v45  ;;  %v1279_v2 = vpop.f32.mrb[35].mxu0 }
 0x433   : > { %v1364_v3 = vpack.c.bf16 %v1349_v63, %v1348_v48  ;;  %v1280_v4 = vadd.f32 %v1927_v45, %v1279_v2 }
 0x434   : > { %v1351_v5 = vmax.f32 %v1285_v1, 0.0 }
 0x435   : > { %v1350_v6 = vmax.f32 %v1280_v4, 0.0  ;;  %2239 = vmatprep.mubr.bf16.mxu0 %v1364_v3  ;;  %v2207_v8 = vpop.f32.mrb[36].mxu0 }
 0x436   : > { %v1295_v10 = vadd.f32 %v2207_v8, %v1927_v45  ;;  %v1289_v11 = vpop.f32.mrb[37].mxu0 }
 0x437   : > { %v1365_v12 = vpack.c.bf16 %v1351_v5, %v1350_v6  ;;  %v1290_v13 = vadd.f32 %v1927_v45, %v1289_v11 }
 0x438   : > { %v1353_v14 = vmax.f32 %v1295_v10, 0.0 }
 0x439   : > { %v1352_v15 = vmax.f32 %v1290_v13, 0.0  ;;  %v2210_v16 = vpop.f32.mrb[38].mxu0  ;;  %2240 = vmatmul.mubr.bf16.vlgmr.msra.gmra.mrb[48].mxu0 %v1365_v12 }
 0x43a   : > { %v1305_v17 = vadd.f32 %v2210_v16, %v1927_v45  ;;  %v1299_v18 = vpop.f32.mrb[39].mxu0 }
 0x43b   : > { %v1366_v19 = vpack.c.bf16 %v1353_v14, %v1352_v15  ;;  %v1300_v20 = vadd.f32 %v1927_v45, %v1299_v18 }
 0x43c   : > { %v1355_v21 = vmax.f32 %v1305_v17, 0.0 }
 0x43d   : > { %v1354_v22 = vmax.f32 %v1300_v20, 0.0  ;;  %2243 = vmatprep.mubr.bf16.mxu0 %v1366_v19  ;;  %v2213_v23 = vpop.f32.mrb[40].mxu0 }
 0x43e   : > { %v1315_v24 = vadd.f32 %v2213_v23, %v1927_v45  ;;  %v1309_v25 = vpop.f32.mrb[41].mxu0 }
 0x43f   : > { %v1367_v26 = vpack.c.bf16 %v1355_v21, %v1354_v22  ;;  %v1310_v27 = vadd.f32 %v1927_v45, %v1309_v25 }
 0x440   : > { %v1357_v28 = vmax.f32 %v1315_v24, 0.0 }
 0x441   : > { %2244 = vmatmul.mubr.bf16.gmra.mrb[52].mxu0 %v1367_v26  ;;  %v1356_v29 = vmax.f32 %v1310_v27, 0.0  ;;  %v2216_v30 = vpop.f32.mrb[42].mxu0 }
 0x442   : > { %v1325_v31 = vadd.f32 %v2216_v30, %v1927_v45  ;;  %v1319_v32 = vpop.f32.mrb[43].mxu0 }
 0x443   : > { %v1368_v33 = vpack.c.bf16 %v1357_v28, %v1356_v29  ;;  %v1320_v7 = vadd.f32 %v1927_v45, %v1319_v32 }
 0x444   : > { %v1359_v34 = vmax.f32 %v1325_v31, 0.0 }
 0x445   : > { %v1358_v35 = vmax.f32 %v1320_v7, 0.0  ;;  %2247 = vmatprep.mubr.bf16.mxu0 %v1368_v33  ;;  %v2219_v9 = vpop.f32.mrb[44].mxu0 }
 0x446   : > { %v1335_v36 = vadd.f32 %v2219_v9, %v1927_v45  ;;  %v1329_v38 = vpop.f32.mrb[45].mxu0 }
 0x447   : > { %v1369_v39 = vpack.c.bf16 %v1359_v34, %v1358_v35  ;;  %v1330_v41 = vadd.f32 %v1927_v45, %v1329_v38 }
 0x448   : > { %v1361_v42 = vmax.f32 %v1335_v36, 0.0 }
 0x449   : > { %2248 = vmatmul.mubr.bf16.gmra.mrb[56].mxu0 %v1369_v39  ;;  %v1360_v44 = vmax.f32 %v1330_v41, 0.0  ;;  %v2222_v49 = vpop.f32.mrb[46].mxu0 }
 0x44a   : > { %v1345_v47 = vadd.f32 %v2222_v49, %v1927_v45  ;;  %v1339_v61 = vpop.f32.mrb[47].mxu0 }
 0x44b   : > { %v1370_v62 = vpack.c.bf16 %v1361_v42, %v1360_v44  ;;  %v1340_v63 = vadd.f32 %v1927_v45, %v1339_v61 }
 0x44c   : > { %v1363_v48 = vmax.f32 %v1345_v47, 0.0 }
 0x44d   : > { %v1362_v0 = vmax.f32 %v1340_v63, 0.0  ;;  %2251 = vmatprep.mubr.bf16.mxu0 %v1370_v62 }
 0x44f   : > { %v1371_v1 = vpack.c.bf16 %v1363_v48, %v1362_v0 }
 0x451   : > { %2252 = vmatmul.mubr.bf16.gmra.mrb[60].mxu0 %v1371_v1 }
 0x50c   : > { %v2241_v2 = vpop.f32.mrb[48].mxu0 }
 0x50d   : > { %v1470_v3 = vpop.f32.mrb[49].mxu0 }
 0x50e   : > { %v2242_v4 = vpop.f32.mrb[50].mxu0 }
 0x50f   : > { %v2379_v5 = vpack.c.bf16 %v2242_v4, %v2241_v2  ;;  %v1473_v6 = vpop.f32.mrb[51].mxu0 }
 0x510   : > { %v2375_v8 = vpack.c.bf16 %v1473_v6, %v1470_v3 }
 0x512   : > { %2376 = vmatprep.subr.bf16.mxu1 %v2375_v8 }
 0x513   : > { %2378 = vmatpush3.bf16.msra.mxu1 %v2375_v8 }
 0x514   : > { %v2245_v10 = vpop.f32.mrb[52].mxu0  ;;  %2380 = vmatprep.subr.bf16.mxu1 %v2379_v5 }
 0x515   : > { %v1486_v11 = vpop.f32.mrb[53].mxu0 }
 0x516   : > { %v2246_v12 = vpop.f32.mrb[54].mxu0 }
 0x517   : > { %v2387_v13 = vpack.c.bf16 %v2246_v12, %v2245_v10  ;;  %v1489_v14 = vpop.f32.mrb[55].mxu0  ;;  %2382 = vmatpush3.bf16.msra.mxu1 %v2379_v5 }
 0x518   : > { %v2383_v45 = vpack.c.bf16 %v1489_v14, %v1486_v11 }
 0x51a   : > { %2384 = vmatprep.subr.bf16.mxu1 %v2383_v45 }
 0x51b   : > { %2386 = vmatpush3.bf16.msra.mxu1 %v2383_v45 }
 0x51c   : > { %2388 = vmatprep.subr.bf16.mxu1 %v2387_v13  ;;  %v2249_v15 = vpop.f32.mrb[56].mxu0 }
 0x51d   : > { %v1502_v16 = vpop.f32.mrb[57].mxu0 }
 0x51e   : > { %v2250_v17 = vpop.f32.mrb[58].mxu0 }
 0x51f   : > { %2390 = vmatpush3.bf16.msra.mxu1 %v2387_v13  ;;  %v2395_v18 = vpack.c.bf16 %v2250_v17, %v2249_v15  ;;  %v1505_v19 = vpop.f32.mrb[59].mxu0 }
 0x520   : > { %v2391_v20 = vpack.c.bf16 %v1505_v19, %v1502_v16 }
 0x522   : > { %2392 = vmatprep.subr.bf16.mxu1 %v2391_v20 }
 0x523   : > { %2394 = vmatpush3.bf16.msra.mxu1 %v2391_v20 }
 0x524   : > { %2396 = vmatprep.subr.bf16.mxu1 %v2395_v18  ;;  %v2253_v21 = vpop.f32.mrb[60].mxu0 }
 0x525   : > { %v1518_v22 = vpop.f32.mrb[61].mxu0 }
 0x526   : > { %v2254_v23 = vpop.f32.mrb[62].mxu0 }
 0x527   : > { %2398 = vmatpush3.bf16.msra.mxu1 %v2395_v18  ;;  %v2403_v24 = vpack.c.bf16 %v2254_v23, %v2253_v21  ;;  %v1521_v25 = vpop.f32.mrb[63].mxu0 }
 0x528   : > { %v2399_v26 = vpack.c.bf16 %v1521_v25, %v1518_v22 }
 0x52a   : > { %2400 = vmatprep.subr.bf16.mxu1 %v2399_v26 }
 0x52b   : > { %2402 = vmatpush3.bf16.msra.mxu1 %v2399_v26 }
 0x52c   : > { %2404 = vmatprep.subr.bf16.mxu1 %v2403_v24 }
 0x52f   : > { %2406 = vmatpush3.bf16.msra.mxu1 %v2403_v24 }
 0x532   : > { %2288 = vmatmul.mubr.f32.vlgmr.msra.gmra.mrb[64].mxu1 %v2853_v37  ;;  %v1936_v37 = vld [vmem:[%s3137_s7] ss:$0 sm:$0xff] }
 0x533   : > { %2290 = vmatprep.mubr.f32.mxu1 %v2864_v40 }
 0x536   : > { %2291 = vmatmul.mubr.f32.gmra.mrb[66].mxu1 %v2875_v43 }
 0x537   : > { %2293 = vmatprep.mubr.f32.mxu1 %v2886_v46 }
 0x53a   : > { %2294 = vmatmul.mubr.f32.gmra.mrb[68].mxu1 %v2894_v50 }
 0x53b   : > { %2296 = vmatprep.mubr.f32.mxu1 %v2899_v51 }
 0x53e   : > { %2297 = vmatmul.mubr.f32.gmra.mrb[70].mxu1 %v2904_v52 }
 0x53f   : > { %2299 = vmatprep.mubr.f32.mxu1 %v2909_v53 }
 0x542   : > { %2300 = vmatmul.mubr.f32.gmra.mrb[72].mxu1 %v2914_v54 }
 0x543   : > { %2302 = vmatprep.mubr.f32.mxu1 %v2919_v55 }
 0x546   : > { %2303 = vmatmul.mubr.f32.gmra.mrb[74].mxu1 %v2924_v56 }
 0x547   : > { %2305 = vmatprep.mubr.f32.mxu1 %v2929_v57 }
 0x54a   : > { %2306 = vmatmul.mubr.f32.gmra.mrb[76].mxu1 %v2934_v58 }
 0x54b   : > { %2308 = vmatprep.mubr.f32.mxu1 %v2939_v59 }
 0x54e   : > { %2309 = vmatmul.mubr.f32.gmra.mrb[78].mxu1 %v2944_v60 }
 0x605   : > { %v2289_v40 = vpop.f32.mrb[64].mxu1 }
 0x606   : > { %v1612_v43 = vadd.f32 %v2289_v40, %v1936_v37  ;;  %v1606_v46 = vpop.f32.mrb[65].mxu1 }
 0x607   : > { %v1607_v50 = vadd.f32 %v1936_v37, %v1606_v46 }
 0x609   : > { %v1979_v51 = vpack.c.bf16 %v1612_v43, %v1607_v50  ;;  %v2292_v52 = vpop.f32.mrb[66].mxu1 }
 0x60a   : > { %v1622_v53 = vadd.f32 %v2292_v52, %v1936_v37  ;;  %v1616_v54 = vpop.f32.mrb[67].mxu1 }
 0x60b   : > { %1980 = vst [vmem:[%s3068_s26] sm:$0xff] %v1979_v51   ;;  %v1617_v55 = vadd.f32 %v1936_v37, %v1616_v54 }
 0x60d   : > { %v1984_v56 = vpack.c.bf16 %v1622_v53, %v1617_v55  ;;  %v2295_v57 = vpop.f32.mrb[68].mxu1 }
 0x60e   : > { %v1632_v58 = vadd.f32 %v2295_v57, %v1936_v37  ;;  %v1626_v59 = vpop.f32.mrb[69].mxu1 }
 0x60f   : > { %2016 = vst [vmem:[%s3068_s26 + $0x8] sm:$0xff] %v1984_v56   ;;  %v1627_v60 = vadd.f32 %v1936_v37, %v1626_v59 }
 0x611   : > { %v1989_v27 = vpack.c.bf16 %v1632_v58, %v1627_v60  ;;  %v2298_v28 = vpop.f32.mrb[70].mxu1 }
 0x612   : > { %v1642_v29 = vadd.f32 %v2298_v28, %v1936_v37  ;;  %v1636_v30 = vpop.f32.mrb[71].mxu1 }
 0x613   : > { %2017 = vst [vmem:[%s3068_s26 + $0x10] sm:$0xff] %v1989_v27   ;;  %v1637_v31 = vadd.f32 %v1936_v37, %v1636_v30 }
 0x615   : > { %v1994_v32 = vpack.c.bf16 %v1642_v29, %v1637_v31  ;;  %v2301_v33 = vpop.f32.mrb[72].mxu1 }
 0x616   : > { %v1652_v7 = vadd.f32 %v2301_v33, %v1936_v37  ;;  %v1646_v34 = vpop.f32.mrb[73].mxu1 }
 0x617   : > { %2018 = vst [vmem:[%s3068_s26 + $0x18] sm:$0xff] %v1994_v32   ;;  %v1647_v35 = vadd.f32 %v1936_v37, %v1646_v34 }
 0x619   : > { %v1999_v9 = vpack.c.bf16 %v1652_v7, %v1647_v35  ;;  %v2304_v36 = vpop.f32.mrb[74].mxu1 }
 0x61a   : > { %v1662_v38 = vadd.f32 %v2304_v36, %v1936_v37  ;;  %v1656_v39 = vpop.f32.mrb[75].mxu1 }
 0x61b   : > { %2019 = vst [vmem:[%s3068_s26 + $0x20] sm:$0xff] %v1999_v9   ;;  %v1657_v41 = vadd.f32 %v1936_v37, %v1656_v39 }
 0x61d   : > { %v2004_v42 = vpack.c.bf16 %v1662_v38, %v1657_v41  ;;  %v2307_v44 = vpop.f32.mrb[76].mxu1 }
 0x61e   : > { %v1672_v49 = vadd.f32 %v2307_v44, %v1936_v37  ;;  %v1666_v47 = vpop.f32.mrb[77].mxu1 }
 0x61f   : > { %2020 = vst [vmem:[%s3068_s26 + $0x28] sm:$0xff] %v2004_v42   ;;  %v1667_v61 = vadd.f32 %v1936_v37, %v1666_v47 }
 0x621   : > { %v2009_v62 = vpack.c.bf16 %v1672_v49, %v1667_v61  ;;  %v2310_v63 = vpop.f32.mrb[78].mxu1 }
 0x622   : > { %v1682_v48 = vadd.f32 %v2310_v63, %v1936_v37  ;;  %v1676_v0 = vpop.f32.mrb[79].mxu1 }
 0x623   : > { %2021 = vst [vmem:[%s3068_s26 + $0x30] sm:$0xff] %v2009_v62   ;;  %v1677_v1 = vadd.f32 %v1936_v37, %v1676_v0 }
 0x625   : > { %v2014_v2 = vpack.c.bf16 %v1682_v48, %v1677_v1 }
 0x627   : > { %2022 = vst [vmem:[%s3068_s26 + $0x38] sm:$0xff] %v2014_v2  }
 0x628   : > { %2558 = shalt.err (!%p2555_p3)
}
 0x629   : > { %s2559_s20 = scalar_lea.hbm %s3082_s21, 1024  ;;  %s2563_s26 = scalar_lea.hbm %s3138_s8, 4096 }
 0x62a   : > { %p2560_p4 = scmp.ne.s32.totalorder %s3082_s21, %s2559_s20  ;;  %p2564_p9 = scmp.lt.u32.totalorder %s3082_s21, %s3138_s8 }
 0x62b   : > { %p2565_p10 = scmp.lt.u32.totalorder %s2563_s26, %s2559_s20  ;;  %p2567_p12 = scmp.lt.u32.totalorder %s2559_s20, %s3082_s21 }
 0x62c   : > { %p2561_p7 = pnand %p2560_p4, %p2696_p5 }
 0x62d   : > { %p2566_p11 = por %p2565_p10, %p2564_p9 }
 0x62e   : > { %p2562_p8 = pneg %p2561_p7 }
 0x62f   : > { %p2568_p13 = por %p2567_p12, %p2566_p11 }
 0x631   : > { %p2569_p0 = pnand %p2568_p13, %p2562_p8 }
 0x633   : > { %2572 = shalt.err (!%p2569_p0)
}
 0x634   : > { %s2611_s19 = smov 64   ;;  %s2612_s9 = smov 4  }
 0x635   : > { %2407 = dma.vmem_to_hbm [thread:$0]  (%p2696_p5), %s3084_s17, 1024, %s3082_s21, %s3089_s22, %s2611_s19, %s2611_s19, %s2612_s9  }
 0x636 PF: > { %p2413_p1 = scmp.ge.s32.totalorder %s2607_s30, 2  ;;  %s1794_s10 = sand.u32 1, %s2595_s27  }
 0x637   : > { %s1795_s12 = scalar_lea.sflag [#allocation3], %s1794_s10 }
 0x638   : > { %p2410_p2 = pnand %p2413_p1, %p2700_p6 }
 0x63a   : > { %2590 = dma.done.wait (!%p2410_p2), %s1795_s12, 1024  }
 0x63b   : > { %2592 = vsyncadd (!%p2410_p2), %s1795_s12, 4294966272  ;;  %p18_p3 = scmp.ge.s32.totalorder %s2683_s11, 6   ;;  %s3141_s27 = smov %s2599_s28 }
 0x63c   : > { %s3142_s28 = smov %s2603_s29  ;;  %s3143_s29 = smov %s2694_s14 }
 0x63d   : > { %s3144_s30 = smov %s2683_s11  ;;  %20 = sbr.rel (!%p18_p3) target bundleno = 3 (0x3), region = 90 }
 0x644   :  { %1800 = vsyncpa [#allocation3], 1 }
 0x645   :  { %1802 = vsyncpa [#allocation3 + $0x1], 1 }

</bundles_post_ra>
